<compile_context>
chip_gen: v6e
topology: v6e:2x2x1
jax: 0.10.0
libtpu: 0.0.40
codegen_flags: <defaults>
</compile_context>

<pallas_src>
import functools

import jax
import jax.numpy as jnp
from jax.experimental import pallas as pl
from jax.experimental.pallas import tpu as pltpu

OFFSET = 1e-07
_LANE = 128
_TARGET_BLOCK_BYTES = 4 * 1024 * 1024   # ~4 MiB per buffer (fits all gens)
_VMEM_LIMIT_BYTES = 32 * 1024 * 1024    # 2 ops x 2 bufs x 4 MiB << 32 MiB
_TINY_BYPASS_BYTES = 512 * 1024         # below this, plain fused XLA wins


def _round_up(v: int, m: int) -> int:
    return ((v + m - 1) // m) * m


def _posrelu_kernel(x_ref, o_ref, *, offset):
    # relu(x - offset) + offset == max(x, offset): one VPU op per vreg.
    o_ref[...] = jnp.maximum(x_ref[...], offset)


def _posrelu_2d(x2d: jnp.ndarray, row_tile: int, offset: float) -> jnp.ndarray:
    """Run the kernel on a lane-dense (rows, width) slab."""
    rows, width = x2d.shape
    itemsize = jnp.dtype(x2d.dtype).itemsize
    n_total = rows * width
    kernel = functools.partial(_posrelu_kernel, offset=offset)
    return pl.pallas_call(
        kernel,
        out_shape=jax.ShapeDtypeStruct((rows, width), x2d.dtype),
        grid_spec=pltpu.PrefetchScalarGridSpec(
            num_scalar_prefetch=0,
            grid=(pl.cdiv(rows, row_tile),),
            in_specs=[pl.BlockSpec((row_tile, width), lambda i: (i, 0))],
            out_specs=pl.BlockSpec((row_tile, width), lambda i: (i, 0)),
        ),
        compiler_params=pltpu.CompilerParams(
            dimension_semantics=("parallel",),
            vmem_limit_bytes=_VMEM_LIMIT_BYTES,
        ),
        input_output_aliases={0: 0},
        cost_estimate=pl.CostEstimate(
            flops=n_total,
            transcendentals=0,
            bytes_accessed=2 * n_total * itemsize,
        ),
    )(x2d)


def pos_relu(x: jnp.ndarray, offset: float = OFFSET, *,
             min_pallas_bytes: int = _TINY_BYPASS_BYTES) -> jnp.ndarray:
    """Elementwise PosReLU: relu(x - offset) + offset. Any shape / float dtype."""
    orig_shape = x.shape
    dtype = x.dtype
    n = x.size
    if n == 0:
        return x
    itemsize = jnp.dtype(dtype).itemsize
    off = jnp.asarray(offset, dtype)

    # Tiny inputs: launch + pipeline overhead dominates; fused XLA is faster.
    if n * itemsize < min_pallas_bytes:
        return jnp.maximum(x, off)

    x_flat = jnp.reshape(x, (-1,))
    n_aligned = (n // _LANE) * _LANE
    n_tail = n - n_aligned
    if n_aligned == 0:
        return jnp.maximum(x, off)

    # dtype-aware sublane granule: f32 -> 8, bf16/f16 -> 16, int8/fp8 -> 32.
    sublane = max(8, 32 // max(itemsize, 1))

    # Widest lane-dense last dim dividing the aligned element count.
    width = _LANE
    for cand in (4096, 2048, 1024, 512, 256):
        if n_aligned % cand == 0:
            width = cand
            break
    rows = n_aligned // width

    if rows <= sublane:
        row_tile = rows                      # single block == full array dims
    else:
        # ~4 MiB blocks, rounded down to the sublane granule ...
        row_tile = max(
            sublane,
            (_TARGET_BLOCK_BYTES // (width * itemsize) // sublane) * sublane)
        # ... but at least 2 blocks so both v7x TensorCores get work.
        half_rows = _round_up((rows + 1) // 2, sublane)
        row_tile = min(row_tile, half_rows)

    if n_tail == 0:
        out2d = _posrelu_2d(jnp.reshape(x_flat, (rows, width)), row_tile, offset)
        return jnp.reshape(out2d, orig_shape)

    # Misaligned size: kernel on the 128-aligned prefix, plain-jnp tail
    # (<128 elements) — avoids jnp.pad / output-slice full-array copies.
    head2d = _posrelu_2d(jnp.reshape(x_flat[:n_aligned], (rows, width)),
                         row_tile, offset)
    tail = jnp.maximum(x_flat[n_aligned:], off)
    out_flat = jnp.concatenate([jnp.reshape(head2d, (-1,)), tail])
    return jnp.reshape(out_flat, orig_shape)


def pos_relu_ref(x: jnp.ndarray, offset: float = OFFSET) -> jnp.ndarray:
    # Literal PyTorch expression: relu(x - offset) + offset.
    return jax.nn.relu(x - offset) + offset


if __name__ == "__main__":
    key = jax.random.PRNGKey(0)
    # NCHW feature map, matching typical PyTorch usage of PosReLU.
    x = jax.random.normal(key, (2, 4, 16, 16), dtype=jnp.float32)

    # Force the Pallas path for the small demo tensor (the production default
    # routes tensors this small straight to fused XLA).
    out = jax.block_until_ready(pos_relu(x, min_pallas_bytes=0))
    ref = pos_relu_ref(x)
    assert out.shape == x.shape and out.dtype == x.dtype
    assert jnp.allclose(out, ref, atol=1e-6, rtol=1e-6)

    # Misaligned-size path: 128-aligned prefix through Pallas + jnp tail.
    x_odd = jax.random.normal(jax.random.PRNGKey(1), (3, 7, 11), jnp.float32)
    out_odd = jax.block_until_ready(pos_relu(x_odd, min_pallas_bytes=0))
    assert jnp.allclose(out_odd, pos_relu_ref(x_odd), atol=1e-6, rtol=1e-6)

    # Default tiny-input bypass path.
    out_tiny = jax.block_until_ready(pos_relu(x))
    assert jnp.allclose(out_tiny, ref, atol=1e-6, rtol=1e-6)

    print("KERNEL_OK")
</pallas_src>

<mosaic_0001>
module attributes {stable_mosaic.version = 11 : i64} {
  func.func @_posrelu_kernel(%arg0: i32, %arg1: memref<1x2048xf32, #tpu.memory_space<vmem>>, %arg2: memref<1x2048xf32, #tpu.memory_space<vmem>>) attributes {dimension_semantics = [#tpu.dimension_semantics<parallel>], iteration_bounds = array<i64: 1>, scalar_prefetch = 0 : i64, scratch_operands = 0 : i64, tpu.core_type = #tpu.core_type<tc>, window_params = [{transform_indices = @transform_0, window_bounds = array<i64: 1, 2048>}, {transform_indices = @transform_1, window_bounds = array<i64: 1, 2048>}]} {
    %c0 = arith.constant 0 : index
    %c0_0 = arith.constant 0 : index
    %0 = vector.load %arg1[%c0, %c0_0] : memref<1x2048xf32, #tpu.memory_space<vmem>>, vector<1x2048xf32>
    %cst = arith.constant 1.000000e-07 : f32
    %1 = vector.broadcast %cst : f32 to vector<1x2048xf32>
    %2 = arith.maximumf %0, %1 : vector<1x2048xf32>
    %c0_1 = arith.constant 0 : index
    %c0_2 = arith.constant 0 : index
    %3 = vector.load %arg2[%c0_1, %c0_2] : memref<1x2048xf32, #tpu.memory_space<vmem>>, vector<1x2048xf32>
    tpu.vector_store %arg2[%c0_1, %c0_2], %2 {strides = array<i32>} : memref<1x2048xf32, #tpu.memory_space<vmem>>, vector<1x2048xf32>,
    return
  }
  func.func @transform_0(%arg0: i32) -> (i32, i32) {
    %c0_i32 = arith.constant 0 : i32
    %c0_i32_0 = arith.constant 0 : i32
    return %arg0, %c0_i32 : i32, i32
  }
  func.func @transform_1(%arg0: i32) -> (i32, i32) {
    %c0_i32 = arith.constant 0 : i32
    %c0_i32_0 = arith.constant 0 : i32
    return %arg0, %c0_i32 : i32, i32
  }
}

</mosaic_0001>

<bundles_post_ra>
// kernel: tpu_custom_call.1
= control target key start
LH: loop header
LB: loop body
LE: loop exit
PB: predicated region body
PF: predicated region fallthrough
CT: control target
= control target key end

     0   :  { %6 = vsyncpa [#allocation3], 0  ;;  %s106_s0 = inlined_call_operand.hbm [shape: f32[1,2048], index: 0, kind: input, shape index: {}, may-alias: {0,1}]   ;;  %s107_s1 = inlined_call_operand.hbm [shape: f32[1,2048], index: 1, kind: output, shape index: {}, may-alias: {0,1}]  }
   0x1   :  { %7 = vsyncpa [#allocation4], 0  ;;  %s88_s6 = smov [#allocation2]  }
   0x2   :  { %s14_s7 = sshll.u32 %s88_s6, 4  ;;  %s15_s7 = int_to_ptr.vmem [resolvable:$true] %s14_s7 }
   0x3   :  { %s52_s8 = scalar_lea.vmem %s15_s7, 256  ;;  %p57_p1 = scmp.lt.s32.totalorder %s15_s7, %s15_s7 }
   0x4   :  { %p53_p0 = scmp.ne.s32.totalorder %s15_s7, %s52_s8  ;;  %p58_p2 = scmp.lt.s32.totalorder %s52_s8, %s52_s8 }
   0x6   :  { %p59_p3 = por %p58_p2, %p57_p1 }
   0x8   :  { %p60_p4 = pnand %p59_p3, %p53_p0 }
   0xa   :  { %63 = shalt.err (!%p60_p4)
}
   0xb   :  { %17 = dma.hbm_to_vmem [thread:$0]  %s106_s0, 256, %s15_s7, [#allocation3]  }
   0xc   :  { %84 = dma.done.wait [#allocation3], 256  }
   0xd   :  { %85 = vsyncadd [#allocation3], 4294967040  ;;  %s89_s11 = smov [#allocation5]   ;;  %v21_v0 = vld [vmem:[#allocation2] sm:$0xff]  ;;  %v22_v1 = vld [vmem:[#allocation2 + $0x8] sm:$0xff] }
   0xe   :  { %s33_s12 = sshll.u32 %s89_s11, 4  ;;  %v23_v2 = vmax.f32 %v21_v0, 1e-07  ;;  %v24_v3 = vmax.f32 %v22_v1, 1e-07  ;;  %s34_s12 = int_to_ptr.vmem [resolvable:$true] %s33_s12 }
   0xf   :  { %s64_s13 = scalar_lea.vmem %s34_s12, 256  ;;  %p69_p6 = scmp.lt.s32.totalorder %s34_s12, %s34_s12 }
  0x10   :  { %25 = vst [vmem:[#allocation5] sm:$0xff] %v23_v2  ;;  %26 = vst [vmem:[#allocation5 + $0x8] sm:$0xff] %v24_v3  ;;  %p65_p5 = scmp.ne.s32.totalorder %s34_s12, %s64_s13  ;;  %p70_p7 = scmp.lt.s32.totalorder %s64_s13, %s64_s13 }
  0x12   :  { %p71_p8 = por %p70_p7, %p69_p6 }
  0x14   :  { %p72_p9 = pnand %p71_p8, %p65_p5 }
  0x16   :  { %75 = shalt.err (!%p72_p9)
}
  0x17   :  { %36 = dma.vmem_to_hbm [thread:$0]  %s34_s12, 256, %s107_s1, [#allocation4]  }
  0x18   :  { %86 = dma.done.wait [#allocation4], 256  }
  0x19   :  { %87 = vsyncadd [#allocation4], 4294967040 }
  0x1a   :  { %40 = vsyncpa [#allocation3], 1 }
  0x1b   :  { %41 = vsyncpa [#allocation4], 1 }

</bundles_post_ra>
